<compile_context>
chip_gen: v6e
topology: v6e:2x2x1
jax: 0.10.0
libtpu: 0.0.40
codegen_flags: <defaults>
</compile_context>

<pallas_src>
import functools

import jax
import jax.numpy as jnp
from jax import lax
from jax.experimental import pallas as pl
from jax.experimental.pallas import tpu as pltpu

OUT_CHANNELS = 5
KERNEL_SIZE = 4
HALO = KERNEL_SIZE - 1


def cnn1d_kernel(w_ref, b_ref, x_ref, o_ref, carry_ref, runmax_ref,
                 *, seq_len, len_tile):
    # w_ref:      (C, K)  f32 SMEM  -- Conv1d weight (in_channels=1 squeezed)
    # b_ref:      (1, C)  f32 VMEM  -- Conv1d bias
    # x_ref:      (TB,TL) f32 VMEM  -- one (batch-tile, length-chunk) of x
    # o_ref:      (TB, C) f32 VMEM  -- resident across the length axis
    # carry_ref:  (TB,K-1)f32 VMEM  -- halo: last K-1 columns of previous chunk
    # runmax_ref: (TB, C) f32 VMEM  -- running max of the raw conv output
    j = pl.program_id(1)
    n_l = pl.num_programs(1)

    @pl.when(j == 0)
    def _():
        runmax_ref[...] = jnp.full(runmax_ref.shape, -jnp.inf,
                                   dtype=runmax_ref.dtype)

    x = x_ref[...]                                          # (TB, TL)

    # Window p of this step starts at global position t = j*TL - (K-1) + p.
    ext = jnp.concatenate([carry_ref[...], x], axis=-1)     # (TB, TL + K - 1)

    # Hoisted shifted views: 4 lane shifts reused by all 5 channels.
    taps = [ext[:, k:k + len_tile] for k in range(KERNEL_SIZE)]

    # Hoisted validity mask: kills windows that touch the (uninitialized)
    # halo at j==0 and windows past the end of the sequence (ragged chunk).
    p = lax.broadcasted_iota(jnp.int32, (1, len_tile), 1)
    t = p + (j * len_tile - HALO)                            # global start
    valid = (t >= 0) & (t <= seq_len - KERNEL_SIZE)          # (1, TL)

    cols = []
    for c in range(OUT_CHANNELS):                            # C = 5, unrolled
        acc = taps[0] * w_ref[c, 0]
        for k in range(1, KERNEL_SIZE):                      # K = 4, unrolled
            acc = acc + taps[k] * w_ref[c, k]
        acc = jnp.where(valid, acc, -jnp.inf)                # select, NaN-safe
        cols.append(jnp.max(acc, axis=-1, keepdims=True))    # (TB, 1)
    step_max = jnp.concatenate(cols, axis=-1)                # (TB, C)
    runmax_ref[...] = jnp.maximum(runmax_ref[...], step_max)

    # Halo for the next length chunk (unused / harmless on the last step).
    carry_ref[...] = x[:, len_tile - HALO:]

    @pl.when(j == n_l - 1)
    def _():
        # tanh is monotonic -> bias + tanh applied after the max (B*C EUP ops).
        o_ref[...] = jnp.tanh(runmax_ref[...] + b_ref[...])


def _input_tile_bytes_target():
    """Per-generation f32 input-tile byte target."""
    try:
        kind = jax.devices()[0].device_kind.lower()
    except Exception:
        kind = ""
    if "v6" in kind:
        return 4 << 20      # v6e: 128 MiB physical VMEM, amortize step overhead
    if "v7" in kind or "7x" in kind:
        return 3 << 20      # v7x: only 64 MiB VMEM per TC, 2 TCs want >=2 steps
    return 2 << 20          # v5e & unknown: conservative (16 MiB default scoped)


def _pick_tiles(B, L, tile_bytes):
    """(batch_tile, len_tile): (8,128)-legal tiles, >=2 grid steps when possible."""
    # Length tile: whole L if it fits with >= 8 batch rows, else multiple of 128.
    if 8 * L * 4 <= tile_bytes:
        tl = L
    else:
        tl = max(128, (tile_bytes // (8 * 4)) // 128 * 128)
    nl = pl.cdiv(L, tl)

    # Batch tile: multiple of 8, or full B when B < 16 (cannot legally split).
    if B < 16:
        tb = B
    else:
        tb = max(8, (tile_bytes // (tl * 4)) // 8 * 8)
        if tb >= B:
            tb = B
        # Guarantee >= 2 total grid steps (v7x megacore + DMA/compute overlap).
        if nl * pl.cdiv(B, tb) < 2:
            tb = max(8, ((B // 2) // 8) * 8)
    return tb, tl


def cnn_1d_forward(x, weight, bias, *, batch_tile=None, len_tile=None):
    """x: (B, L) f32; weight: (5, 1, 4) f32; bias: (5,) f32 -> (B, 5) f32."""
    B, L = x.shape
    assert L >= KERNEL_SIZE, "input length must be >= kernel size"
    w2d = weight.reshape(OUT_CHANNELS, KERNEL_SIZE).astype(jnp.float32)
    b2d = bias.reshape(1, OUT_CHANNELS).astype(jnp.float32)
    x = x.astype(jnp.float32)

    tgt = _input_tile_bytes_target()
    tb_auto, tl_auto = _pick_tiles(B, L, tgt)
    tb = batch_tile if batch_tile is not None else tb_auto
    tl = len_tile if len_tile is not None else tl_auto
    nb, nl = pl.cdiv(B, tb), pl.cdiv(L, tl)

    # Live set ~= 2x double-buffered input + ext + 4 taps + temps ~= 9 tiles.
    vmem_limit = max(9 * tb * tl * 4 + (2 << 20), 16 << 20)

    kernel = functools.partial(cnn1d_kernel, seq_len=L, len_tile=tl)

    return pl.pallas_call(
        kernel,
        out_shape=jax.ShapeDtypeStruct((B, OUT_CHANNELS), jnp.float32),
        grid=(nb, nl),
        in_specs=[
            # Tiny conv weight: whole array in SMEM, read as scalars.
            pl.BlockSpec(memory_space=pltpu.MemorySpace.SMEM),
            # Bias: tiny (1, C) VMEM operand, same block every step.
            pl.BlockSpec((1, OUT_CHANNELS), lambda i, j: (0, 0)),
            # Input: (batch, length)-tiled, software-pipelined HBM->VMEM DMA.
            pl.BlockSpec((tb, tl), lambda i, j: (i, j)),
        ],
        # Output block fixed across the length axis -> accumulator pattern.
        out_specs=pl.BlockSpec((tb, OUT_CHANNELS), lambda i, j: (i, 0)),
        scratch_shapes=[
            pltpu.VMEM((tb, HALO), jnp.float32),          # halo carry
            pltpu.VMEM((tb, OUT_CHANNELS), jnp.float32),  # running max
        ],
        compiler_params=pltpu.CompilerParams(
            dimension_semantics=("parallel", "arbitrary"),
            vmem_limit_bytes=int(vmem_limit)),
    )(w2d, b2d, x)


def reference_forward(x, weight, bias):
    """Plain-JAX reference matching the PyTorch semantics."""
    w2d = weight.reshape(OUT_CHANNELS, KERNEL_SIZE)
    B, L = x.shape
    Lout = L - KERNEL_SIZE + 1
    cols = jnp.stack([x[:, k:k + Lout] for k in range(KERNEL_SIZE)], axis=1)
    y = jnp.einsum('ck,bkt->bct', w2d, cols) + bias[None, :, None]
    return jnp.max(jnp.tanh(y), axis=-1)


if __name__ == "__main__":
    key = jax.random.PRNGKey(0)
    kx, kw, kb, kx2 = jax.random.split(key, 4)

    # Conv1d(1, 5, 4): weight (5, 1, 4), bias (5,); uniform(-bound, bound)
    # with bound = 1/sqrt(fan_in) like PyTorch's default init.
    bound = 1.0 / (1 * KERNEL_SIZE) ** 0.5
    weight = jax.random.uniform(kw, (OUT_CHANNELS, 1, KERNEL_SIZE),
                                minval=-bound, maxval=bound, dtype=jnp.float32)
    bias = jax.random.uniform(kb, (OUT_CHANNELS,),
                              minval=-bound, maxval=bound, dtype=jnp.float32)

    # --- small shape matching the module (single tile, grid (1, 1)) ---
    B, L = 2, 16
    x = jax.random.normal(kx, (B, L), dtype=jnp.float32)
    out = jax.block_until_ready(cnn_1d_forward(x, weight, bias))
    ref = reference_forward(x, weight, bias)
    assert out.shape == (B, OUT_CHANNELS), out.shape
    assert jnp.allclose(out, ref, atol=1e-5, rtol=1e-5), (out, ref)

    # --- exercise the multi-tile path: halo carry, running max, ragged tiles ---
    B2, L2 = 32, 300
    x2 = jax.random.normal(kx2, (B2, L2), dtype=jnp.float32)
    out2 = jax.block_until_ready(
        cnn_1d_forward(x2, weight, bias, batch_tile=8, len_tile=128))
    ref2 = reference_forward(x2, weight, bias)
    assert out2.shape == (B2, OUT_CHANNELS), out2.shape
    assert jnp.allclose(out2, ref2, atol=1e-5, rtol=1e-5), (out2, ref2)

    print("KERNEL_OK")
</pallas_src>

<mosaic_0001>
module attributes {stable_mosaic.version = 11 : i64} {
  func.func @cnn1d_kernel(%arg0: i32, %arg1: i32, %arg2: memref<5x4xf32, #tpu.memory_space<smem>>, %arg3: memref<1x5xf32, #tpu.memory_space<vmem>>, %arg4: memref<2x16xf32, #tpu.memory_space<vmem>>, %arg5: memref<2x5xf32, #tpu.memory_space<vmem>>, %arg6: memref<2x3xf32, #tpu.memory_space<vmem>>, %arg7: memref<2x5xf32, #tpu.memory_space<vmem>>) attributes {dimension_semantics = [#tpu.dimension_semantics<parallel>, #tpu.dimension_semantics<arbitrary>], iteration_bounds = array<i64: 1, 1>, scalar_prefetch = 0 : i64, scratch_operands = 2 : i64, tpu.core_type = #tpu.core_type<tc>, window_params = [{transform_indices = @transform_0, window_bounds = array<i64: 5, 4>}, {pipeline_mode = #tpu.pipeline_mode<synchronous>, transform_indices = @transform_1, window_bounds = array<i64: 1, 5>}, {transform_indices = @transform_2, window_bounds = array<i64: 2, 16>}, {transform_indices = @transform_3, window_bounds = array<i64: 2, 5>}]} {
    %c0_i32 = arith.constant 0 : i32
    %0 = arith.cmpi eq, %arg1, %c0_i32 : i32
    %1 = arith.extui %0 : i1 to i32
    %c0_i32_0 = arith.constant 0 : i32
    %2 = arith.cmpi ne, %1, %c0_i32_0 : i32
    scf.if %2 {
      %cst_58 = arith.constant 0xFF800000 : f32
      %134 = vector.broadcast %cst_58 : f32 to vector<2x5xf32>
      %c0_59 = arith.constant 0 : index
      %c0_60 = arith.constant 0 : index
      %135 = vector.load %arg7[%c0_59, %c0_60] : memref<2x5xf32, #tpu.memory_space<vmem>>, vector<2x5xf32>
      tpu.vector_store %arg7[%c0_59, %c0_60], %134 {strides = array<i32>} : memref<2x5xf32, #tpu.memory_space<vmem>>, vector<2x5xf32>,
    } else {
    }
    %c0 = arith.constant 0 : index
    %c0_1 = arith.constant 0 : index
    %3 = vector.load %arg4[%c0, %c0_1] : memref<2x16xf32, #tpu.memory_space<vmem>>, vector<2x16xf32>
    %c0_2 = arith.constant 0 : index
    %c0_3 = arith.constant 0 : index
    %4 = vector.load %arg6[%c0_2, %c0_3] : memref<2x3xf32, #tpu.memory_space<vmem>>, vector<2x3xf32>
    %5 = tpu.concatenate %4, %3 in 1 : vector<2x3xf32>, vector<2x16xf32> -> vector<2x19xf32>
    %6 = vector.extract_strided_slice %5 {offsets = [0, 0], sizes = [2, 16], strides = [1, 1]} : vector<2x19xf32> to vector<2x16xf32>
    %7 = vector.extract_strided_slice %5 {offsets = [0, 1], sizes = [2, 16], strides = [1, 1]} : vector<2x19xf32> to vector<2x16xf32>
    %8 = vector.extract_strided_slice %5 {offsets = [0, 2], sizes = [2, 16], strides = [1, 1]} : vector<2x19xf32> to vector<2x16xf32>
    %9 = vector.extract_strided_slice %5 {offsets = [0, 3], sizes = [2, 16], strides = [1, 1]} : vector<2x19xf32> to vector<2x16xf32>
    %10 = tpu.iota {dimensions = array<i32: 1>} : vector<1x16xi32>
    %c16_i32 = arith.constant 16 : i32
    %11 = arith.muli %arg1, %c16_i32 : i32
    %c3_i32 = arith.constant 3 : i32
    %12 = arith.subi %11, %c3_i32 : i32
    %13 = vector.broadcast %12 : i32 to vector<1x16xi32>
    %14 = arith.addi %10, %13 : vector<1x16xi32>
    %c0_i32_4 = arith.constant 0 : i32
    %15 = vector.broadcast %c0_i32_4 : i32 to vector<1x16xi32>
    %16 = arith.cmpi sge, %14, %15 : vector<1x16xi32>
    %c12_i32 = arith.constant 12 : i32
    %17 = vector.broadcast %c12_i32 : i32 to vector<1x16xi32>
    %18 = arith.cmpi sle, %14, %17 : vector<1x16xi32>
    %19 = arith.andi %16, %18 : vector<1x16xi1>
    %c0_5 = arith.constant 0 : index
    %c0_6 = arith.constant 0 : index
    %20 = memref.load %arg2[%c0_5, %c0_6] : memref<5x4xf32, #tpu.memory_space<smem>>
    %21 = vector.broadcast %20 : f32 to vector<2x16xf32>
    %22 = arith.mulf %6, %21 : vector<2x16xf32>
    %c0_7 = arith.constant 0 : index
    %c1 = arith.constant 1 : index
    %23 = memref.load %arg2[%c0_7, %c1] : memref<5x4xf32, #tpu.memory_space<smem>>
    %24 = vector.broadcast %23 : f32 to vector<2x16xf32>
    %25 = arith.mulf %7, %24 : vector<2x16xf32>
    %26 = arith.addf %22, %25 : vector<2x16xf32>
    %c0_8 = arith.constant 0 : index
    %c2 = arith.constant 2 : index
    %27 = memref.load %arg2[%c0_8, %c2] : memref<5x4xf32, #tpu.memory_space<smem>>
    %28 = vector.broadcast %27 : f32 to vector<2x16xf32>
    %29 = arith.mulf %8, %28 : vector<2x16xf32>
    %30 = arith.addf %26, %29 : vector<2x16xf32>
    %c0_9 = arith.constant 0 : index
    %c3 = arith.constant 3 : index
    %31 = memref.load %arg2[%c0_9, %c3] : memref<5x4xf32, #tpu.memory_space<smem>>
    %32 = vector.broadcast %31 : f32 to vector<2x16xf32>
    %33 = arith.mulf %9, %32 : vector<2x16xf32>
    %34 = arith.addf %30, %33 : vector<2x16xf32>
    %cst = arith.constant 0xFF800000 : f32
    %35 = vector.shape_cast %19 : vector<1x16xi1> to vector<1x16xi1>
    %36 = vector.broadcast %35 : vector<1x16xi1> to vector<2x16xi1>
    %37 = vector.broadcast %cst : f32 to vector<2x16xf32>
    %38 = arith.select %36, %34, %37 : vector<2x16xi1>, vector<2x16xf32>
    %cst_10 = arith.constant dense<0xFF800000> : vector<2xf32>
    %39 = vector.multi_reduction <maximumf>, %38, %cst_10 [1] : vector<2x16xf32> to vector<2xf32>
    %40 = vector.shape_cast %39 : vector<2xf32> to vector<2x1xf32>
    %c1_11 = arith.constant 1 : index
    %c0_12 = arith.constant 0 : index
    %41 = memref.load %arg2[%c1_11, %c0_12] : memref<5x4xf32, #tpu.memory_space<smem>>
    %42 = vector.broadcast %41 : f32 to vector<2x16xf32>
    %43 = arith.mulf %6, %42 : vector<2x16xf32>
    %c1_13 = arith.constant 1 : index
    %c1_14 = arith.constant 1 : index
    %44 = memref.load %arg2[%c1_13, %c1_14] : memref<5x4xf32, #tpu.memory_space<smem>>
    %45 = vector.broadcast %44 : f32 to vector<2x16xf32>
    %46 = arith.mulf %7, %45 : vector<2x16xf32>
    %47 = arith.addf %43, %46 : vector<2x16xf32>
    %c1_15 = arith.constant 1 : index
    %c2_16 = arith.constant 2 : index
    %48 = memref.load %arg2[%c1_15, %c2_16] : memref<5x4xf32, #tpu.memory_space<smem>>
    %49 = vector.broadcast %48 : f32 to vector<2x16xf32>
    %50 = arith.mulf %8, %49 : vector<2x16xf32>
    %51 = arith.addf %47, %50 : vector<2x16xf32>
    %c1_17 = arith.constant 1 : index
    %c3_18 = arith.constant 3 : index
    %52 = memref.load %arg2[%c1_17, %c3_18] : memref<5x4xf32, #tpu.memory_space<smem>>
    %53 = vector.broadcast %52 : f32 to vector<2x16xf32>
    %54 = arith.mulf %9, %53 : vector<2x16xf32>
    %55 = arith.addf %51, %54 : vector<2x16xf32>
    %cst_19 = arith.constant 0xFF800000 : f32
    %56 = vector.shape_cast %19 : vector<1x16xi1> to vector<1x16xi1>
    %57 = vector.broadcast %56 : vector<1x16xi1> to vector<2x16xi1>
    %58 = vector.broadcast %cst_19 : f32 to vector<2x16xf32>
    %59 = arith.select %57, %55, %58 : vector<2x16xi1>, vector<2x16xf32>
    %cst_20 = arith.constant dense<0xFF800000> : vector<2xf32>
    %60 = vector.multi_reduction <maximumf>, %59, %cst_20 [1] : vector<2x16xf32> to vector<2xf32>
    %61 = vector.shape_cast %60 : vector<2xf32> to vector<2x1xf32>
    %c2_21 = arith.constant 2 : index
    %c0_22 = arith.constant 0 : index
    %62 = memref.load %arg2[%c2_21, %c0_22] : memref<5x4xf32, #tpu.memory_space<smem>>
    %63 = vector.broadcast %62 : f32 to vector<2x16xf32>
    %64 = arith.mulf %6, %63 : vector<2x16xf32>
    %c2_23 = arith.constant 2 : index
    %c1_24 = arith.constant 1 : index
    %65 = memref.load %arg2[%c2_23, %c1_24] : memref<5x4xf32, #tpu.memory_space<smem>>
    %66 = vector.broadcast %65 : f32 to vector<2x16xf32>
    %67 = arith.mulf %7, %66 : vector<2x16xf32>
    %68 = arith.addf %64, %67 : vector<2x16xf32>
    %c2_25 = arith.constant 2 : index
    %c2_26 = arith.constant 2 : index
    %69 = memref.load %arg2[%c2_25, %c2_26] : memref<5x4xf32, #tpu.memory_space<smem>>
    %70 = vector.broadcast %69 : f32 to vector<2x16xf32>
    %71 = arith.mulf %8, %70 : vector<2x16xf32>
    %72 = arith.addf %68, %71 : vector<2x16xf32>
    %c2_27 = arith.constant 2 : index
    %c3_28 = arith.constant 3 : index
    %73 = memref.load %arg2[%c2_27, %c3_28] : memref<5x4xf32, #tpu.memory_space<smem>>
    %74 = vector.broadcast %73 : f32 to vector<2x16xf32>
    %75 = arith.mulf %9, %74 : vector<2x16xf32>
    %76 = arith.addf %72, %75 : vector<2x16xf32>
    %cst_29 = arith.constant 0xFF800000 : f32
    %77 = vector.shape_cast %19 : vector<1x16xi1> to vector<1x16xi1>
    %78 = vector.broadcast %77 : vector<1x16xi1> to vector<2x16xi1>
    %79 = vector.broadcast %cst_29 : f32 to vector<2x16xf32>
    %80 = arith.select %78, %76, %79 : vector<2x16xi1>, vector<2x16xf32>
    %cst_30 = arith.constant dense<0xFF800000> : vector<2xf32>
    %81 = vector.multi_reduction <maximumf>, %80, %cst_30 [1] : vector<2x16xf32> to vector<2xf32>
    %82 = vector.shape_cast %81 : vector<2xf32> to vector<2x1xf32>
    %c3_31 = arith.constant 3 : index
    %c0_32 = arith.constant 0 : index
    %83 = memref.load %arg2[%c3_31, %c0_32] : memref<5x4xf32, #tpu.memory_space<smem>>
    %84 = vector.broadcast %83 : f32 to vector<2x16xf32>
    %85 = arith.mulf %6, %84 : vector<2x16xf32>
    %c3_33 = arith.constant 3 : index
    %c1_34 = arith.constant 1 : index
    %86 = memref.load %arg2[%c3_33, %c1_34] : memref<5x4xf32, #tpu.memory_space<smem>>
    %87 = vector.broadcast %86 : f32 to vector<2x16xf32>
    %88 = arith.mulf %7, %87 : vector<2x16xf32>
    %89 = arith.addf %85, %88 : vector<2x16xf32>
    %c3_35 = arith.constant 3 : index
    %c2_36 = arith.constant 2 : index
    %90 = memref.load %arg2[%c3_35, %c2_36] : memref<5x4xf32, #tpu.memory_space<smem>>
    %91 = vector.broadcast %90 : f32 to vector<2x16xf32>
    %92 = arith.mulf %8, %91 : vector<2x16xf32>
    %93 = arith.addf %89, %92 : vector<2x16xf32>
    %c3_37 = arith.constant 3 : index
    %c3_38 = arith.constant 3 : index
    %94 = memref.load %arg2[%c3_37, %c3_38] : memref<5x4xf32, #tpu.memory_space<smem>>
    %95 = vector.broadcast %94 : f32 to vector<2x16xf32>
    %96 = arith.mulf %9, %95 : vector<2x16xf32>
    %97 = arith.addf %93, %96 : vector<2x16xf32>
    %cst_39 = arith.constant 0xFF800000 : f32
    %98 = vector.shape_cast %19 : vector<1x16xi1> to vector<1x16xi1>
    %99 = vector.broadcast %98 : vector<1x16xi1> to vector<2x16xi1>
    %100 = vector.broadcast %cst_39 : f32 to vector<2x16xf32>
    %101 = arith.select %99, %97, %100 : vector<2x16xi1>, vector<2x16xf32>
    %cst_40 = arith.constant dense<0xFF800000> : vector<2xf32>
    %102 = vector.multi_reduction <maximumf>, %101, %cst_40 [1] : vector<2x16xf32> to vector<2xf32>
    %103 = vector.shape_cast %102 : vector<2xf32> to vector<2x1xf32>
    %c4 = arith.constant 4 : index
    %c0_41 = arith.constant 0 : index
    %104 = memref.load %arg2[%c4, %c0_41] : memref<5x4xf32, #tpu.memory_space<smem>>
    %105 = vector.broadcast %104 : f32 to vector<2x16xf32>
    %106 = arith.mulf %6, %105 : vector<2x16xf32>
    %c4_42 = arith.constant 4 : index
    %c1_43 = arith.constant 1 : index
    %107 = memref.load %arg2[%c4_42, %c1_43] : memref<5x4xf32, #tpu.memory_space<smem>>
    %108 = vector.broadcast %107 : f32 to vector<2x16xf32>
    %109 = arith.mulf %7, %108 : vector<2x16xf32>
    %110 = arith.addf %106, %109 : vector<2x16xf32>
    %c4_44 = arith.constant 4 : index
    %c2_45 = arith.constant 2 : index
    %111 = memref.load %arg2[%c4_44, %c2_45] : memref<5x4xf32, #tpu.memory_space<smem>>
    %112 = vector.broadcast %111 : f32 to vector<2x16xf32>
    %113 = arith.mulf %8, %112 : vector<2x16xf32>
    %114 = arith.addf %110, %113 : vector<2x16xf32>
    %c4_46 = arith.constant 4 : index
    %c3_47 = arith.constant 3 : index
    %115 = memref.load %arg2[%c4_46, %c3_47] : memref<5x4xf32, #tpu.memory_space<smem>>
    %116 = vector.broadcast %115 : f32 to vector<2x16xf32>
    %117 = arith.mulf %9, %116 : vector<2x16xf32>
    %118 = arith.addf %114, %117 : vector<2x16xf32>
    %cst_48 = arith.constant 0xFF800000 : f32
    %119 = vector.shape_cast %19 : vector<1x16xi1> to vector<1x16xi1>
    %120 = vector.broadcast %119 : vector<1x16xi1> to vector<2x16xi1>
    %121 = vector.broadcast %cst_48 : f32 to vector<2x16xf32>
    %122 = arith.select %120, %118, %121 : vector<2x16xi1>, vector<2x16xf32>
    %cst_49 = arith.constant dense<0xFF800000> : vector<2xf32>
    %123 = vector.multi_reduction <maximumf>, %122, %cst_49 [1] : vector<2x16xf32> to vector<2xf32>
    %124 = vector.shape_cast %123 : vector<2xf32> to vector<2x1xf32>
    %125 = tpu.concatenate %40, %61, %82, %103, %124 in 1 : vector<2x1xf32>, vector<2x1xf32>, vector<2x1xf32>, vector<2x1xf32>, vector<2x1xf32> -> vector<2x5xf32>
    %c0_50 = arith.constant 0 : index
    %c0_51 = arith.constant 0 : index
    %126 = vector.load %arg7[%c0_50, %c0_51] : memref<2x5xf32, #tpu.memory_space<vmem>>, vector<2x5xf32>
    %127 = arith.maximumf %126, %125 : vector<2x5xf32>
    %c0_52 = arith.constant 0 : index
    %c0_53 = arith.constant 0 : index
    %128 = vector.load %arg7[%c0_52, %c0_53] : memref<2x5xf32, #tpu.memory_space<vmem>>, vector<2x5xf32>
    tpu.vector_store %arg7[%c0_52, %c0_53], %127 {strides = array<i32>} : memref<2x5xf32, #tpu.memory_space<vmem>>, vector<2x5xf32>,
    %129 = vector.extract_strided_slice %3 {offsets = [0, 13], sizes = [2, 3], strides = [1, 1]} : vector<2x16xf32> to vector<2x3xf32>
    %c0_54 = arith.constant 0 : index
    %c0_55 = arith.constant 0 : index
    %130 = vector.load %arg6[%c0_54, %c0_55] : memref<2x3xf32, #tpu.memory_space<vmem>>, vector<2x3xf32>
    tpu.vector_store %arg6[%c0_54, %c0_55], %129 {strides = array<i32>} : memref<2x3xf32, #tpu.memory_space<vmem>>, vector<2x3xf32>,
    %c0_i32_56 = arith.constant 0 : i32
    %131 = arith.cmpi eq, %arg1, %c0_i32_56 : i32
    %132 = arith.extui %131 : i1 to i32
    %c0_i32_57 = arith.constant 0 : i32
    %133 = arith.cmpi ne, %132, %c0_i32_57 : i32
    scf.if %133 {
      %c0_58 = arith.constant 0 : index
      %c0_59 = arith.constant 0 : index
      %134 = vector.load %arg7[%c0_58, %c0_59] : memref<2x5xf32, #tpu.memory_space<vmem>>, vector<2x5xf32>
      %c0_60 = arith.constant 0 : index
      %c0_61 = arith.constant 0 : index
      %135 = vector.load %arg3[%c0_60, %c0_61] : memref<1x5xf32, #tpu.memory_space<vmem>>, vector<1x5xf32>
      %136 = vector.broadcast %135 : vector<1x5xf32> to vector<2x5xf32>
      %137 = arith.addf %134, %136 : vector<2x5xf32>
      %138 = math.tanh %137 : vector<2x5xf32>
      %c0_62 = arith.constant 0 : index
      %c0_63 = arith.constant 0 : index
      %139 = vector.load %arg5[%c0_62, %c0_63] : memref<2x5xf32, #tpu.memory_space<vmem>>, vector<2x5xf32>
      tpu.vector_store %arg5[%c0_62, %c0_63], %138 {strides = array<i32>} : memref<2x5xf32, #tpu.memory_space<vmem>>, vector<2x5xf32>,
    } else {
    }
    return
  }
  func.func @transform_0(%arg0: i32, %arg1: i32) -> (i32, i32) {
    %c0_i32 = arith.constant 0 : i32
    %c0_i32_0 = arith.constant 0 : i32
    %c0_i32_1 = arith.constant 0 : i32
    return %c0_i32, %c0_i32_0 : i32, i32
  }
  func.func @transform_1(%arg0: i32, %arg1: i32) -> (i32, i32) {
    %c0_i32 = arith.constant 0 : i32
    %c0_i32_0 = arith.constant 0 : i32
    %c0_i32_1 = arith.constant 0 : i32
    return %c0_i32, %c0_i32_0 : i32, i32
  }
  func.func @transform_2(%arg0: i32, %arg1: i32) -> (i32, i32) {
    %c0_i32 = arith.constant 0 : i32
    return %arg0, %arg1 : i32, i32
  }
  func.func @transform_3(%arg0: i32, %arg1: i32) -> (i32, i32) {
    %c0_i32 = arith.constant 0 : i32
    %c0_i32_0 = arith.constant 0 : i32
    return %arg0, %c0_i32 : i32, i32
  }
}

</mosaic_0001>

<bundles_post_ra>
// kernel: tpu_custom_call.1
= control target key start
LH: loop header
LB: loop body
LE: loop exit
PB: predicated region body
PF: predicated region fallthrough
CT: control target
= control target key end

     0   :  { %8 = vsyncpa [#allocation6], 0  ;;  %s415_s0 = inlined_call_operand.vmem [shape: f32[5,4], index: 0, kind: input, shape index: {}]   ;;  %s416_s1 = inlined_call_operand.vmem [shape: f32[1,5], index: 1, kind: input, shape index: {}]   ;;  %s417_s2 = inlined_call_operand.vmem [shape: f32[2,16], index: 2, kind: input, shape index: {}]   ;;  %s418_s3 = inlined_call_operand.hbm [shape: f32[2,5], index: 3, kind: output, shape index: {}]  }
   0x1   :  { %9 = vsyncpa [#allocation5], 0  ;;  %s16_s14 = sshll.u32 %s415_s0, 4  ;;  %s17_s14 = int_to_ptr.vmem [resolvable:$true] %s16_s14 }
   0x2   :  { %s284_s15 = scalar_lea.vmem %s17_s14, 128  ;;  %p289_p1 = scmp.lt.s32.totalorder %s17_s14, %s17_s14 }
   0x3   :  { %p285_p0 = scmp.ne.s32.totalorder %s17_s14, %s284_s15  ;;  %p290_p2 = scmp.lt.s32.totalorder %s284_s15, %s284_s15 }
   0x5   :  { %p291_p3 = por %p290_p2, %p289_p1 }
   0x7   :  { %p292_p4 = pnand %p291_p3, %p285_p0 }
   0x9   :  { %295 = shalt.err (!%p292_p4)
}
   0xa   :  { %s320_s16 = smov [#allocation4]  }
   0xb   :  { %19 = dma.vmem_to_smem %s17_s14, 128, %s320_s16, [#allocation6]  }
   0xc   :  { %316 = dma.done.wait [#allocation6], 128  }
   0xd   :  { %317 = vsyncadd [#allocation6], 4294967168 }
   0xe   :  { %27 = sfence }
   0xf   :  { %v354_v0 = vld [vmem:[%s417_s2] sm:$0x3]  ;;  %s321_s19 = smov 3   ;;  %s258_s0 = sld [smem:[#allocation4 + $0x81]]  ;;  %vm40_vm0 = vcmask 23552   ;;  %v42_v36 = vlaneseq  ;;  %vm81_vm4 = vcmask 123904  }
  0x10   :  { %37 = vrot.lane.b32.xlu0 %v354_v0, %s321_s19  ;;  %s254_s20 = sld [smem:[#allocation4 + $0x1]]  ;;  %v35_v1 = vld [vmem:[#allocation2] sm:$0x3]  ;;  %s322_s26 = smov 127   ;;  %vm32_vm5 = vcmask 33792   ;;  %vm209_vm6 = vcmask 7168  }
  0x11   :  { %s262_s21 = sld [smem:[#allocation4 + $0x101]]  ;;  %s323_s29 = smov 126   ;;  %v43_v39 = vand.u32 127, %v42_v36  ;;  %vm211_vm7 = vcmask 15360   ;;  %vm214_vm8 = vcmask 31744   ;;  %vm223_vm9 = vcmask 17408  }
  0x12   :  { %s255_s22 = sld [smem:[#allocation4 + $0x2]]  ;;  %s324_s8 = smov 125  }
  0x13   :  { %s259_s23 = sld [smem:[#allocation4 + $0x82]]  ;;  %v47_v44 = vadd.s32 4294967293, %v43_v39  ;;  %s326_s14 = smov 115  }
  0x14   :  { %s266_s24 = sld [smem:[#allocation4 + $0x181]]  ;;  %s327_s17 = smov [#allocation7]  }
  0x15   :  { %v89_v2 = vstv %s258_s0  ;;  %s263_s2 = sld [smem:[#allocation4 + $0x102]]  ;;  %vm48_vm1 = vcmp.ge.s32.totalorder %v47_v44, 0  ;;  %vm49_vm2 = vcmp.le.s32.totalorder %v47_v44, 12  ;;  %s245_s18 = sshll.u32 %s327_s17, 4  ;;  %s246_s18 = int_to_ptr.vmem [resolvable:$true] %s245_s18 }
  0x16   :  { %v55_v3 = vstv %s254_s20  ;;  %s270_s25 = sld [smem:[#allocation4 + $0x201]]  ;;  %vm383_vm3 = vmand %vm48_vm1, %vm49_vm2  ;;  %s296_s19 = scalar_lea.vmem %s246_s18, 32 }
  0x17   :  { %v120_v8 = vstv %s262_s21  ;;  %s256_s27 = sld [smem:[#allocation4 + $0x3]]  ;;  %p297_p5 = scmp.ne.s32.totalorder %s246_s18, %s296_s19 }
  0x18   :  { %v63_v9 = vstv %s255_s22  ;;  %s260_s28 = sld [smem:[#allocation4 + $0x83]]  ;;  %p301_p6 = scmp.lt.s32.totalorder %s246_s18, %s246_s18 }
  0x19   :  { %v97_v12 = vstv %s259_s23  ;;  %s267_s30 = sld [smem:[#allocation4 + $0x182]]  ;;  %p302_p7 = scmp.lt.s32.totalorder %s296_s19, %s296_s19 }
  0x1a   :  { %v151_v13 = vstv %s266_s24  ;;  %s264_s4 = sld [smem:[#allocation4 + $0x103]] }
  0x1b   :  { %v128_v16 = vstv %s263_s2  ;;  %s271_s5 = sld [smem:[#allocation4 + $0x202]]  ;;  %p303_p8 = por %p302_p7, %p301_p6 }
  0x1c   :  { %v182_v17 = vstv %s270_s25  ;;  %s268_s6 = sld [smem:[#allocation4 + $0x183]] }
  0x1d   :  { %v71_v20 = vstv %s256_s27  ;;  %s272_s7 = sld [smem:[#allocation4 + $0x203]]  ;;  %p304_p9 = pnand %p303_p8, %p297_p5 }
  0x1e   :  { %v105_v21 = vstv %s260_s28  ;;  %s257_s9 = sld [smem:[#allocation4 + $0x80]] }
  0x1f   :  { %v159_v24 = vstv %s267_s30  ;;  %s51_s10 = sld [smem:[#allocation4]] }
  0x20   :  { %v136_v25 = vstv %s264_s4  ;;  %s261_s11 = sld [smem:[#allocation4 + $0x100]] }
  0x21   :  { %v190_v28 = vstv %s271_s5  ;;  %s265_s12 = sld [smem:[#allocation4 + $0x180]] }
  0x22   :  { %v167_v29 = vstv %s268_s6  ;;  %s269_s13 = sld [smem:[#allocation4 + $0x200]] }
  0x23   :  { %v198_v32 = vstv %s272_s7 }
  0x24   :  { %v86_v40 = vstv %s257_s9 }
  0x25   :  { %v52_v41 = vstv %s51_s10 }
  0x26   :  { %v117_v47 = vstv %s261_s11 }
  0x27   :  { %v148_v55 = vstv %s265_s12 }
  0x82   :  { %v38_v4 = vpop.permute.xlu0 %37 }
  0x83   :  { %v358_v5 = vsel %vm40_vm0, %v35_v1, %v38_v4 }
  0x84   :  { %v90_v6 = vmul.f32 %v89_v2, %v358_v5  ;;  %v56_v7 = vmul.f32 %v55_v3, %v358_v5  ;;  %v121_v10 = vmul.f32 %v120_v8, %v358_v5  ;;  %v64_v11 = vmul.f32 %v63_v9, %v358_v5 }
  0x85   :  { %v98_v14 = vmul.f32 %v97_v12, %v358_v5  ;;  %v152_v15 = vmul.f32 %v151_v13, %v358_v5  ;;  %v129_v18 = vmul.f32 %v128_v16, %v358_v5  ;;  %v183_v19 = vmul.f32 %v182_v17, %v358_v5 }
  0x86   :  { %92 = vrot.lane.b32.xlu1 %v90_v6, %s322_s26  ;;  %58 = vrot.lane.b32.xlu0 %v56_v7, %s322_s26  ;;  %v72_v22 = vmul.f32 %v71_v20, %v358_v5  ;;  %v106_v23 = vmul.f32 %v105_v21, %v358_v5  ;;  %v160_v26 = vmul.f32 %v159_v24, %v358_v5  ;;  %v179_v3 = vstv %s269_s13 }
  0x87   :  { %v137_v27 = vmul.f32 %v136_v25, %v358_v5  ;;  %v191_v30 = vmul.f32 %v190_v28, %v358_v5  ;;  %v168_v31 = vmul.f32 %v167_v29, %v358_v5  ;;  %v199_v33 = vmul.f32 %v198_v32, %v358_v5 }
  0x88   :  { %v87_v45 = vmul.f32 %v86_v40, %v358_v5  ;;  %v53_v46 = vmul.f32 %v52_v41, %v358_v5  ;;  %v118_v52 = vmul.f32 %v117_v47, %v358_v5  ;;  %v149_v62 = vmul.f32 %v148_v55, %v358_v5 }
  0x89   :  { %v325_v25 = vmov -inf  }
  0x8a   :  { %123 = vrot.lane.b32.xlu1 %v121_v10, %s322_s26  ;;  %66 = vrot.lane.b32.xlu0 %v64_v11, %s323_s29  ;;  %v180_v11 = vmul.f32 %v179_v3, %v358_v5  ;;  %33 = vst.msk [vmem:[#allocation3] sm:$0x3] %vm32_vm5, %v325_v25 }
  0x8e   :  { %100 = vrot.lane.b32.xlu1 %v98_v14, %s323_s29  ;;  %154 = vrot.lane.b32.xlu0 %v152_v15, %s322_s26 }
  0x91   :  { %v216_v32 = vld [vmem:[#allocation3] sm:$0x3] }
  0x92   :  { %131 = vrot.lane.b32.xlu1 %v129_v18, %s323_s29  ;;  %185 = vrot.lane.b32.xlu0 %v183_v19, %s322_s26 }
  0x96   :  { %74 = vrot.lane.b32.xlu1 %v72_v22, %s324_s8  ;;  %108 = vrot.lane.b32.xlu0 %v106_v23, %s324_s8 }
  0x9a   :  { %162 = vrot.lane.b32.xlu1 %v160_v26, %s323_s29  ;;  %139 = vrot.lane.b32.xlu0 %v137_v27, %s324_s8 }
  0x9e   :  { %193 = vrot.lane.b32.xlu1 %v191_v30, %s323_s29  ;;  %170 = vrot.lane.b32.xlu0 %v168_v31, %s324_s8 }
  0xa2   :  { %201 = vrot.lane.b32.xlu1 %v199_v33, %s324_s8 }
  0xf8   :  { %v93_v34 = vpop.permute.xlu1 %92  ;;  %v59_v35 = vpop.permute.xlu0 %58 }
  0xf9   :  { %v95_v50 = vadd.f32 %v93_v34, %v87_v45  ;;  %v61_v51 = vadd.f32 %v59_v35, %v53_v46 }
  0xfc   :  { %v124_v37 = vpop.permute.xlu1 %123  ;;  %v67_v38 = vpop.permute.xlu0 %66 }
  0xfd   :  { %v69_v53 = vadd.f32 %v67_v38, %v61_v51  ;;  %v126_v59 = vadd.f32 %v124_v37, %v118_v52 }
 0x100   :  { %v101_v42 = vpop.permute.xlu1 %100  ;;  %v155_v43 = vpop.permute.xlu0 %154 }
 0x101   :  { %v103_v54 = vadd.f32 %v101_v42, %v95_v50  ;;  %v157_v9 = vadd.f32 %v155_v43, %v149_v62 }
 0x104   :  { %v132_v48 = vpop.permute.xlu1 %131  ;;  %v186_v49 = vpop.permute.xlu0 %185 }
 0x105   :  { %v134_v63 = vadd.f32 %v132_v48, %v126_v59  ;;  %v188_v17 = vadd.f32 %v186_v49, %v180_v11 }
 0x108   :  { %v75_v56 = vpop.permute.xlu1 %74  ;;  %v109_v57 = vpop.permute.xlu0 %108 }
 0x109   :  { %v77_v60 = vadd.f32 %v75_v56, %v69_v53  ;;  %v111_v61 = vadd.f32 %v109_v57, %v103_v54 }
 0x10b   :  { %v112_v1 = vsel %vm383_vm3, %v111_v61, -inf  ;;  %v80_v2 = vsel %vm383_vm3, %v77_v60, -inf }
 0x10c   :  { %v163_v4 = vpop.permute.xlu1 %162  ;;  %v140_v6 = vpop.permute.xlu0 %139  ;;  %v113_v7 = vsel %vm81_vm4, %v112_v1, -inf  ;;  %v82_v8 = vsel %vm81_vm4, %v80_v2, -inf }
 0x10d   :  { %v142_v10 = vadd.f32 %v140_v6, %v134_v63  ;;  %114 = vmax.xlane.f32.xlu1 %v113_v7  ;;  %83 = vmax.xlane.f32.xlu0 %v82_v8  ;;  %v165_v12 = vadd.f32 %v163_v4, %v157_v9 }
 0x10f   :  { %v143_v13 = vsel %vm383_vm3, %v142_v10, -inf }
 0x110   :  { %v194_v14 = vpop.permute.xlu1 %193  ;;  %v171_v15 = vpop.permute.xlu0 %170  ;;  %v144_v16 = vsel %vm81_vm4, %v143_v13, -inf }
 0x111   :  { %v173_v18 = vadd.f32 %v171_v15, %v165_v12  ;;  %145 = vmax.xlane.f32.xlu0 %v144_v16  ;;  %v196_v19 = vadd.f32 %v194_v14, %v188_v17 }
 0x113   :  { %v174_v20 = vsel %vm383_vm3, %v173_v18, -inf }
 0x114   :  { %v202_v21 = vpop.permute.xlu1 %201  ;;  %v175_v22 = vsel %vm81_vm4, %v174_v20, -inf }
 0x115   :  { %v204_v23 = vadd.f32 %v202_v21, %v196_v19  ;;  %176 = vmax.xlane.f32.xlu0 %v175_v22 }
 0x117   :  { %v205_v5 = vsel %vm383_vm3, %v204_v23, -inf }
 0x118   :  { %v206_v24 = vsel %vm81_vm4, %v205_v5, -inf }
 0x119   :  { %207 = vmax.xlane.f32.xlu1 %v206_v24 }
 0x12b   :  { %220 = vrot.lane.b32.xlu0 %v354_v0, %s326_s14  ;;  %v273_v0 = vld [vmem:[%s416_s1] ss:$0 sm:$0xff] }
 0x196   :  { %v84_v26 = vpop.xlane.xlu0 %83  ;;  %v115_v28 = vpop.xlane.xlu1 %114 }
 0x197   :  { %v210_v30 = vsel %vm209_vm6, %v84_v26, %v115_v28 }
 0x19a   :  { %v146_v27 = vpop.xlane.xlu0 %145 }
 0x19b   :  { %v212_v31 = vsel %vm211_vm7, %v210_v30, %v146_v27 }
 0x19e   :  { %v177_v29 = vpop.xlane.xlu0 %176 }
 0x19f   :  { %v213_v33 = vsel %vm40_vm0, %v212_v31, %v177_v29 }
 0x1a2   :  { %v208_v34 = vpop.xlane.xlu1 %207  ;;  %v221_v35 = vpop.permute.xlu0 %220 }
 0x1a3   :  { %v215_v36 = vsel %vm214_vm8, %v213_v33, %v208_v34  ;;  %224 = vst.msk [vmem:[#allocation2] sm:$0x3] %vm223_vm9, %v221_v35 }
 0x1a4   :  { %v217_v37 = vmax.f32 %v216_v32, %v215_v36 }
 0x1a6   :  { %219 = vst.msk [vmem:[#allocation3] sm:$0x3] %vm32_vm5, %v217_v37 }
 0x1ad   :  { %v228_v38 = vld [vmem:[#allocation3] sm:$0x3] }
 0x1ae   :  { %v236_v39 = vadd.f32 %v273_v0, %v228_v38 }
 0x1b0   :  { %282 = vtanh.f32 %v236_v39 }
 0x1bd   :  { %v283_v40 = vpop.eup %282 }
 0x1be   :  { %238 = vst.msk [vmem:[#allocation7] sm:$0x3] %vm32_vm5, %v283_v40 }
 0x1bf   :  { %307 = shalt.err (!%p304_p9)
}
 0x1c0   :  { %248 = dma.vmem_to_hbm [thread:$0]  %s246_s18, 32, %s418_s3, [#allocation5]  }
 0x1c1   :  { %318 = dma.done.wait [#allocation5], 32  }
 0x1c2   :  { %319 = vsyncadd [#allocation5], 4294967264 }
 0x1c3   :  { %252 = vsyncpa [#allocation5], 1 }
 0x1c4   :  { %253 = vsyncpa [#allocation6], 1 }

</bundles_post_ra>
